<compile_context>
chip_gen: v7x
topology: tpu7x:2x2x1
jax: 0.10.0
libtpu: 0.0.40
codegen_flags: <defaults>
</compile_context>

<pallas_src>
import functools

import numpy as np
import jax
import jax.numpy as jnp
from jax.experimental import pallas as pl
from jax.experimental.pallas import tpu as pltpu  # noqa: F401 (TPU backend)


# ----------------------------------------------------------------------------
# Fused Pallas kernel
# ----------------------------------------------------------------------------

def _apply_noise_kernel(w_ref, b_ref, r_ref, x_ref, n_ref, m_ref, o_ref, *, n, cm):
    """out = x + (w_c * noise + b_c) * (1 - nearest_resize(mask)).

    w_ref, b_ref : (C, 1)         per-channel scale / bias (second half zero)
    r_ref        : (Hm*Wm, H*W)   one-hot nearest-neighbour resize matrix
    x_ref, n_ref : (N, C, H*W)    input / gaussian noise (lane-dense, H*W % 128 == 0)
    m_ref        : (N*Cm, Hm*Wm)  low-res mask (Cm == 1 or C)
    o_ref        : (N, C, H*W)
    """
    x = x_ref[...].astype(jnp.float32)                       # (N, C, HW)
    noise = n_ref[...].astype(jnp.float32)                   # (N, C, HW)
    w = w_ref[...].astype(jnp.float32)[None, :, :]           # (1, C, 1)
    b = b_ref[...].astype(jnp.float32)[None, :, :]           # (1, C, 1)

    # Nearest-neighbour F.interpolate as a single MXU matmul with a one-hot matrix.
    m_up = jnp.dot(m_ref[...].astype(jnp.float32),
                   r_ref[...].astype(jnp.float32),
                   preferred_element_type=jnp.float32)       # (N*Cm, HW)
    m_up = m_up.reshape(n, cm, m_up.shape[-1])               # (N, Cm, HW) -> broadcast over C

    adds = w * noise + b
    o_ref[...] = (x + adds * (1.0 - m_up)).astype(o_ref.dtype)


# ----------------------------------------------------------------------------
# Host-side helpers (static setup, no per-element compute)
# ----------------------------------------------------------------------------

def _nearest_resize_matrix(hin, win, hout, wout):
    """One-hot matrix R with (mask.reshape(-1) @ R).reshape(hout, wout) equal to
    F.interpolate(mask, (hout, wout), mode='nearest')  (PyTorch default:
    src = floor(dst * in / out), clamped)."""
    ih = np.minimum((np.arange(hout) * hin) // hout, hin - 1)
    iw = np.minimum((np.arange(wout) * win) // wout, win - 1)
    r = np.zeros((hin * win, hout * wout), dtype=np.float32)
    src = (ih[:, None] * win + iw[None, :]).reshape(-1)      # (hout*wout,)
    dst = np.arange(hout * wout)
    r[src, dst] = 1.0
    return r


def apply_noise(weight, bias, x, noise, mask, *, rng_key):
    """Faithful port of ApplyNoise.forward.

    `noise` is accepted but ignored — the PyTorch reference draws fresh
    randn_like(x) on every call; here that Gaussian is drawn from `rng_key`.
    """
    del noise  # unused by the reference forward (it uses torch.randn_like(x))
    N, C, H, W = x.shape
    Nm, Cm, Hm, Wm = mask.shape
    assert Nm == N and Cm in (1, C) and C % 2 == 0

    half = C // 2
    zeros = jnp.zeros((C - half,), dtype=jnp.float32)
    w_eff = jnp.concatenate([weight[:half].astype(jnp.float32), zeros]).reshape(C, 1)
    b_eff = jnp.concatenate([bias[:half].astype(jnp.float32), zeros]).reshape(C, 1)

    resize = jnp.asarray(_nearest_resize_matrix(Hm, Wm, H, W))      # (Hm*Wm, H*W)
    gauss = jax.random.normal(rng_key, x.shape, dtype=jnp.float32)  # randn_like(x)

    x3 = x.reshape(N, C, H * W)
    n3 = gauss.reshape(N, C, H * W)
    m2 = mask.astype(jnp.float32).reshape(N * Cm, Hm * Wm)

    out = pl.pallas_call(
        functools.partial(_apply_noise_kernel, n=N, cm=Cm),
        out_shape=jax.ShapeDtypeStruct((N, C, H * W), x.dtype),
        grid=(1,),
        in_specs=[
            pl.BlockSpec((C, 1), lambda i: (0, 0)),
            pl.BlockSpec((C, 1), lambda i: (0, 0)),
            pl.BlockSpec((Hm * Wm, H * W), lambda i: (0, 0)),
            pl.BlockSpec((N, C, H * W), lambda i: (0, 0, 0)),
            pl.BlockSpec((N, C, H * W), lambda i: (0, 0, 0)),
            pl.BlockSpec((N * Cm, Hm * Wm), lambda i: (0, 0)),
        ],
        out_specs=pl.BlockSpec((N, C, H * W), lambda i: (0, 0, 0)),
    )(w_eff, b_eff, resize, x3, n3, m2)
    return out.reshape(N, C, H, W)


# ----------------------------------------------------------------------------
# Demo / self-check
# ----------------------------------------------------------------------------

if __name__ == "__main__":
    key = jax.random.PRNGKey(0)
    kx, kn, km, kw, kr = jax.random.split(key, 5)

    N, C, H, W = 2, 4, 16, 16
    Hm, Wm = 8, 8
    x = jax.random.normal(kx, (N, C, H, W), dtype=jnp.float32)
    noise = jax.random.normal(kn, (N, C, H, W), dtype=jnp.float32)   # unused, per reference
    mask = jax.random.uniform(km, (N, 1, Hm, Wm), dtype=jnp.float32)
    weight = jax.random.normal(kw, (C,), dtype=jnp.float32)          # nn.Parameter(torch.randn(C))
    bias = jnp.zeros((C,), dtype=jnp.float32)                        # nn.Parameter(torch.zeros(C))

    fn = jax.jit(apply_noise)
    out = fn(weight, bias, x, noise, mask, rng_key=kr)
    jax.block_until_ready(out)

    assert out.shape == (N, C, H, W)
    assert bool(jnp.all(jnp.isfinite(out)))

    # Pure-JAX reference (same noise draw, same nearest-neighbour semantics).
    half = C // 2
    w_eff = jnp.concatenate([weight[:half], jnp.zeros((C - half,))]).reshape(1, C, 1, 1)
    b_eff = jnp.concatenate([bias[:half], jnp.zeros((C - half,))]).reshape(1, C, 1, 1)
    gauss = jax.random.normal(kr, x.shape, dtype=jnp.float32)
    ih = (jnp.arange(H) * Hm) // H
    iw = (jnp.arange(W) * Wm) // W
    mask_up = mask[:, :, ih, :][:, :, :, iw]
    ref = x + (w_eff * gauss + b_eff) * (1.0 - mask_up)
    assert bool(jnp.allclose(out, ref, atol=1e-5, rtol=1e-5))

    print("KERNEL_OK")
</pallas_src>

<mosaic_0001>
module attributes {stable_mosaic.version = 11 : i64} {
  func.func @_apply_noise_kernel(%arg0: i32, %arg1: memref<4x1xf32, #tpu.memory_space<vmem>>, %arg2: memref<4x1xf32, #tpu.memory_space<vmem>>, %arg3: memref<64x256xf32, #tpu.memory_space<vmem>>, %arg4: memref<2x4x256xf32, #tpu.memory_space<vmem>>, %arg5: memref<2x4x256xf32, #tpu.memory_space<vmem>>, %arg6: memref<2x64xf32, #tpu.memory_space<vmem>>, %arg7: memref<2x4x256xf32, #tpu.memory_space<vmem>>) attributes {dimension_semantics = [#tpu.dimension_semantics<arbitrary>], iteration_bounds = array<i64: 1>, scalar_prefetch = 0 : i64, scratch_operands = 0 : i64, tpu.core_type = #tpu.core_type<tc>, window_params = [{pipeline_mode = #tpu.pipeline_mode<synchronous>, transform_indices = @transform_0, window_bounds = array<i64: 4, 1>}, {pipeline_mode = #tpu.pipeline_mode<synchronous>, transform_indices = @transform_1, window_bounds = array<i64: 4, 1>}, {pipeline_mode = #tpu.pipeline_mode<synchronous>, transform_indices = @transform_2, window_bounds = array<i64: 64, 256>}, {pipeline_mode = #tpu.pipeline_mode<synchronous>, transform_indices = @transform_3, window_bounds = array<i64: 2, 4, 256>}, {pipeline_mode = #tpu.pipeline_mode<synchronous>, transform_indices = @transform_4, window_bounds = array<i64: 2, 4, 256>}, {pipeline_mode = #tpu.pipeline_mode<synchronous>, transform_indices = @transform_5, window_bounds = array<i64: 2, 64>}, {pipeline_mode = #tpu.pipeline_mode<synchronous>, transform_indices = @transform_6, window_bounds = array<i64: 2, 4, 256>}]} {
    %c0 = arith.constant 0 : index
    %c0_0 = arith.constant 0 : index
    %c0_1 = arith.constant 0 : index
    %0 = vector.load %arg4[%c0, %c0_0, %c0_1] : memref<2x4x256xf32, #tpu.memory_space<vmem>>, vector<2x4x256xf32>
    %c0_2 = arith.constant 0 : index
    %c0_3 = arith.constant 0 : index
    %c0_4 = arith.constant 0 : index
    %1 = vector.load %arg5[%c0_2, %c0_3, %c0_4] : memref<2x4x256xf32, #tpu.memory_space<vmem>>, vector<2x4x256xf32>
    %c0_5 = arith.constant 0 : index
    %c0_6 = arith.constant 0 : index
    %2 = vector.load %arg1[%c0_5, %c0_6] : memref<4x1xf32, #tpu.memory_space<vmem>>, vector<4x1xf32>
    %3 = vector.shape_cast %2 : vector<4x1xf32> to vector<1x4x1xf32>
    %c0_7 = arith.constant 0 : index
    %c0_8 = arith.constant 0 : index
    %4 = vector.load %arg2[%c0_7, %c0_8] : memref<4x1xf32, #tpu.memory_space<vmem>>, vector<4x1xf32>
    %5 = vector.shape_cast %4 : vector<4x1xf32> to vector<1x4x1xf32>
    %c0_9 = arith.constant 0 : index
    %c0_10 = arith.constant 0 : index
    %6 = vector.load %arg6[%c0_9, %c0_10] : memref<2x64xf32, #tpu.memory_space<vmem>>, vector<2x64xf32>
    %c0_11 = arith.constant 0 : index
    %c0_12 = arith.constant 0 : index
    %7 = vector.load %arg3[%c0_11, %c0_12] : memref<64x256xf32, #tpu.memory_space<vmem>>, vector<64x256xf32>
    %cst = arith.constant dense<0.000000e+00> : vector<2x256xf32>
    %8 = tpu.matmul %6, %7, %cst {dimension_numbers = #tpu.dot_dimension_numbers<[1], [0], [0], [1], [0, 0, 1, 1], [], []>} : vector<2x64xf32>, vector<64x256xf32>, vector<2x256xf32> -> vector<2x256xf32>
    %9 = vector.shape_cast %8 : vector<2x256xf32> to vector<2x1x256xf32>
    %10 = vector.broadcast %3 : vector<1x4x1xf32> to vector<2x4x256xf32>
    %11 = arith.mulf %10, %1 : vector<2x4x256xf32>
    %12 = vector.broadcast %5 : vector<1x4x1xf32> to vector<2x4x256xf32>
    %13 = arith.addf %11, %12 : vector<2x4x256xf32>
    %cst_13 = arith.constant 1.000000e+00 : f32
    %14 = vector.broadcast %cst_13 : f32 to vector<2x1x256xf32>
    %15 = arith.subf %14, %9 : vector<2x1x256xf32>
    %16 = vector.broadcast %15 : vector<2x1x256xf32> to vector<2x4x256xf32>
    %17 = arith.mulf %13, %16 : vector<2x4x256xf32>
    %18 = arith.addf %0, %17 : vector<2x4x256xf32>
    %c0_14 = arith.constant 0 : index
    %c0_15 = arith.constant 0 : index
    %c0_16 = arith.constant 0 : index
    %19 = vector.load %arg7[%c0_14, %c0_15, %c0_16] : memref<2x4x256xf32, #tpu.memory_space<vmem>>, vector<2x4x256xf32>
    tpu.vector_store %arg7[%c0_14, %c0_15, %c0_16], %18 {strides = array<i32>} : memref<2x4x256xf32, #tpu.memory_space<vmem>>, vector<2x4x256xf32>,
    return
  }
  func.func @transform_0(%arg0: i32) -> (i32, i32) {
    %c0_i32 = arith.constant 0 : i32
    %c0_i32_0 = arith.constant 0 : i32
    %c0_i32_1 = arith.constant 0 : i32
    return %c0_i32, %c0_i32_0 : i32, i32
  }
  func.func @transform_1(%arg0: i32) -> (i32, i32) {
    %c0_i32 = arith.constant 0 : i32
    %c0_i32_0 = arith.constant 0 : i32
    %c0_i32_1 = arith.constant 0 : i32
    return %c0_i32, %c0_i32_0 : i32, i32
  }
  func.func @transform_2(%arg0: i32) -> (i32, i32) {
    %c0_i32 = arith.constant 0 : i32
    %c0_i32_0 = arith.constant 0 : i32
    %c0_i32_1 = arith.constant 0 : i32
    return %c0_i32, %c0_i32_0 : i32, i32
  }
  func.func @transform_3(%arg0: i32) -> (i32, i32, i32) {
    %c0_i32 = arith.constant 0 : i32
    %c0_i32_0 = arith.constant 0 : i32
    %c0_i32_1 = arith.constant 0 : i32
    %c0_i32_2 = arith.constant 0 : i32
    return %c0_i32, %c0_i32_0, %c0_i32_1 : i32, i32, i32
  }
  func.func @transform_4(%arg0: i32) -> (i32, i32, i32) {
    %c0_i32 = arith.constant 0 : i32
    %c0_i32_0 = arith.constant 0 : i32
    %c0_i32_1 = arith.constant 0 : i32
    %c0_i32_2 = arith.constant 0 : i32
    return %c0_i32, %c0_i32_0, %c0_i32_1 : i32, i32, i32
  }
  func.func @transform_5(%arg0: i32) -> (i32, i32) {
    %c0_i32 = arith.constant 0 : i32
    %c0_i32_0 = arith.constant 0 : i32
    %c0_i32_1 = arith.constant 0 : i32
    return %c0_i32, %c0_i32_0 : i32, i32
  }
  func.func @transform_6(%arg0: i32) -> (i32, i32, i32) {
    %c0_i32 = arith.constant 0 : i32
    %c0_i32_0 = arith.constant 0 : i32
    %c0_i32_1 = arith.constant 0 : i32
    %c0_i32_2 = arith.constant 0 : i32
    return %c0_i32, %c0_i32_0, %c0_i32_1 : i32, i32, i32
  }
}

</mosaic_0001>

<bundles_post_ra>
// kernel: apply_noise.1
= control target key start
LH: loop header
LB: loop body
LE: loop exit
PB: predicated region body
PF: predicated region fallthrough
CT: control target
= control target key end

     0   :  { %v239_v3 = vmov 0.0   ;;  %v240_v4 = vmov 0   ;;  %vm46_vm0 = vcmask 523264   ;;  %v241_v29 = vmov 1966171168   ;;  %s352_s2 = inlined_call_operand.vmem [shape: f32[64,256], index: 2, kind: input, shape index: {}]   ;;  %s353_s0 = inlined_call_operand.vmem [shape: f32[4,1], index: 0, kind: input, shape index: {}]   ;;  %s354_s1 = inlined_call_operand.vmem [shape: f32[4,1], index: 1, kind: input, shape index: {}]   ;;  %s355_s5 = inlined_call_operand.vmem [shape: f32[2,64], index: 5, kind: input, shape index: {}]   ;;  %s356_s4 = inlined_call_operand.vmem [shape: f32[2,4,256], index: 4, kind: input, shape index: {}]   ;;  %s357_s3 = inlined_call_operand.vmem [shape: f32[2,4,256], index: 3, kind: input, shape index: {}]   ;;  %s358_s6 = inlined_call_operand.vmem [shape: f32[2,4,256], index: 6, kind: output, shape index: {}]  }
   0x1   :  { %v31_v0 = vld [vmem:[%s352_s2 + $0x8] sm:$0xff]  ;;  %v33_v1 = vld [vmem:[%s352_s2 + $0x18] sm:$0xff]  ;;  %v30_v2 = vld [vmem:[%s352_s2] sm:$0xff]  ;;  %114 = vmatprep.mubr.f32.mxu0 %v239_v3  ;;  %236 = vset.pattern.permute.xlu0 %v240_v4  ;;  %v125_v30 = vunpack.c.l.s4 %v241_v29  ;;  %v127_v31 = vlaneseq }
   0x2   :  { %v217_v5 = vpack.c.bf16 %v33_v1, %v31_v0  ;;  %v32_v6 = vld [vmem:[%s352_s2 + $0x10] sm:$0xff]  ;;  %v35_v7 = vld [vmem:[%s352_s2 + $0x28] sm:$0xff]  ;;  %v37_v8 = vld [vmem:[%s352_s2 + $0x38] sm:$0xff] }
   0x3   :  { %v219_v9 = vpack.c.bf16 %v32_v6, %v30_v2  ;;  %v221_v10 = vpack.c.bf16 %v37_v8, %v35_v7  ;;  %v34_v11 = vld [vmem:[%s352_s2 + $0x20] sm:$0xff]  ;;  %v36_v12 = vld [vmem:[%s352_s2 + $0x30] sm:$0xff]  ;;  %v39_v13 = vld [vmem:[%s352_s2 + $0x48] sm:$0xff]  ;;  %v126_v32 = vunpack.c.0.s8 %v125_v30  ;;  %v128_v33 = vshrl.u32 %v127_v31, 7 }
   0x4   :  { %218 = vmatprep.subr.bf16.mxu0 %v217_v5  ;;  %v41_v14 = vld [vmem:[%s352_s2 + $0x58] sm:$0xff]  ;;  %v223_v15 = vpack.c.bf16 %v36_v12, %v34_v11  ;;  %v38_v17 = vld [vmem:[%s352_s2 + $0x40] sm:$0xff]  ;;  %v40_v18 = vld [vmem:[%s352_s2 + $0x50] sm:$0xff] }
   0x5   :  { %220 = vmatpush1.bf16.msra.mxu0 %v219_v9  ;;  %v225_v16 = vpack.c.bf16 %v41_v14, %v39_v13  ;;  %v27_v19 = vld [vmem:[%s353_s0] sm:$0xf]  ;;  %v43_v20 = vld [vmem:[%s352_s2 + $0x68] sm:$0xff]  ;;  %v45_v21 = vld [vmem:[%s352_s2 + $0x78] sm:$0xff]  ;;  %v227_v23 = vpack.c.bf16 %v40_v18, %v38_v17  ;;  %v129_v36 = vsub.s32 %v126_v32, %v128_v33  ;;  %v178_v44 = vsub.s32 0, %v128_v33 }
   0x6   :  { %222 = vmatprep.subr.bf16.mxu0 %v221_v10  ;;  %150 = vperm.xlu0 %236, %v27_v19   ;;  %v28_v22 = vld [vmem:[%s354_s1] sm:$0xf]  ;;  %v229_v24 = vpack.c.bf16 %v45_v21, %v43_v20  ;;  %v44_v26 = vld [vmem:[%s352_s2 + $0x70] sm:$0xff]  ;;  %v26_v38 = vld [vmem:[%s356_s4 + $0x8] sm:$0xff]  ;;  %v182_v48 = vsub.s32 1, %v128_v33 }
   0x7   :  { %v42_v25 = vld [vmem:[%s352_s2 + $0x60] sm:$0xff]  ;;  %v156_v42 = vcombine.high %v26_v38, %v26_v38  ;;  %v24_v6 = vld [vmem:[%s357_s3 + $0x8] sm:$0xff] }
   0x8   :  { %v231_v27 = vpack.c.bf16 %v44_v26, %v42_v25  ;;  %v29_v28 = vld [vmem:[%s355_s5] sm:$0x3] }
   0x9   :  { %224 = vmatpush1.bf16.msra.mxu0 %v223_v15  ;;  %v25_v34 = vld [vmem:[%s356_s4] sm:$0xff] }
   0xa   :  { %226 = vmatprep.subr.bf16.mxu0 %v225_v16  ;;  %165 = vperm.xlu0 %236, %v28_v22   ;;  %v155_v41 = vcombine.high %v25_v34, %v25_v34  ;;  %v23_v2 = vld [vmem:[%s357_s3] sm:$0xff] }
   0xd   :  { %228 = vmatpush1.bf16.msra.mxu0 %v227_v23 }
   0xe   :  { %230 = vmatprep.subr.bf16.mxu0 %v229_v24 }
  0x11   :  { %232 = vmatpush1.bf16.msra.mxu0 %v231_v27 }
  0x14   :  { %216 = vmatmul.mubr.msk.f32.vlgmr.msra.gmra.mrb[0].mxu0 %vm46_vm0, %v29_v28 }
  0x85   :  { %v151_v37 = vpop.permute.xlu0 %150 }
  0x86   :  { %v159_v45 = vmul.f32 %v151_v37, %v25_v34  ;;  %v160_v49 = vmul.f32 %v155_v41, %v151_v37  ;;  %v161_v51 = vmul.f32 %v151_v37, %v26_v38  ;;  %v162_v52 = vmul.f32 %v156_v42, %v151_v37 }
  0x89   :  { %v166_v50 = vpop.permute.xlu0 %165 }
  0x8a   :  { %v168_v55 = vadd.f32 %v166_v50, %v159_v45  ;;  %v169_v59 = vadd.f32 %v166_v50, %v160_v49  ;;  %v170_v60 = vadd.f32 %v166_v50, %v161_v51  ;;  %v171_v61 = vadd.f32 %v166_v50, %v162_v52 }
  0xe7   :  { %v116_v35 = vpop.f32.mrb[0].mxu0 }
  0xe8   :  { %v118_v39 = vpop.f32.mrb[1].mxu0 }
  0xe9   :  { %v123_v40 = vcombine.low %v116_v35, %v118_v39 }
  0xeb   :  { %v130_v43 = vrot.slane %v123_v40, %v129_v36 }
  0xed   :  { %v131_v46 = vcombine.high %v130_v43, %v130_v43  ;;  %v138_v47 = vrot.slane %v130_v43, %v129_v36 }
  0xef   :  { %v145_v53 = vrot.slane %v131_v46, %v129_v36  ;;  %v172_v54 = vsub.f32 1.0, %v138_v47 }
  0xf1   :  { %v173_v56 = vsub.f32 1.0, %v145_v53  ;;  %v179_v57 = vrot.slane %v172_v54, %v178_v44  ;;  %v183_v58 = vrot.slane %v172_v54, %v182_v48 }
  0xf3   :  { %v187_v62 = vrot.slane %v173_v56, %v178_v44  ;;  %v191_v63 = vrot.slane %v173_v56, %v182_v48  ;;  %v196_v0 = vmul.f32 %v179_v57, %v168_v55  ;;  %v197_v1 = vmul.f32 %v183_v58, %v169_v59 }
  0xf5   :  { %v198_v3 = vmul.f32 %v187_v62, %v170_v60  ;;  %v199_v4 = vmul.f32 %v191_v63, %v171_v61  ;;  %v204_v5 = vcombine.low %v196_v0, %v197_v1 }
  0xf7   :  { %v205_v7 = vcombine.low %v198_v3, %v199_v4  ;;  %v208_v8 = vadd.f32 %v204_v5, %v23_v2 }
  0xf9   :  { %v209_v9 = vadd.f32 %v205_v7, %v24_v6  ;;  %210 = vst [vmem:[%s358_s6] sm:$0xff] %v208_v8 }
  0xfb   :  { %211 = vst [vmem:[%s358_s6 + $0x8] sm:$0xff] %v209_v9 }

</bundles_post_ra>
